<compile_context>
chip_gen: v7x
topology: tpu7x:2x2x1
jax: 0.10.0
libtpu: 0.0.40
codegen_flags: <defaults>
</compile_context>

<pallas_src>
import jax
import jax.numpy as jnp
from jax.experimental import pallas as pl
from jax.experimental.pallas import tpu as pltpu


def se_kernel(x_ref, w1t_ref, b1_ref, w2_ref, b2_ref, o_ref):
    # x_ref: (1, C, HW) block for one batch element; HW on the lane axis.
    x = x_ref[0]                                                   # (C, HW) input dtype
    hw = x.shape[1]
    inv_hw = 1.0 / hw

    # AdaptiveAvgPool2d(1): lane reduction per channel, f32 accumulation.
    pooled = jnp.sum(x, axis=1, keepdims=True, dtype=jnp.float32) * inv_hw   # (C, 1)

    # FC1 (1x1 conv) on the VPU: (C, Cr)*(C, 1) -> sublane-reduce over C -> (1, Cr)
    h = jnp.sum(w1t_ref[...] * pooled, axis=0, keepdims=True) + b1_ref[...]  # (1, Cr)
    h = jnp.maximum(h, 0.0)                                                  # ReLU

    # FC2 (1x1 conv) on the VPU: (C, Cr)*(1, Cr) -> lane-reduce over Cr -> (C, 1)
    s = jnp.sum(w2_ref[...] * h, axis=1, keepdims=True) + b2_ref[...]        # (C, 1)
    s = jax.nn.sigmoid(s)                                                    # Sigmoid

    # x * scale.expand_as(x): per-channel scale broadcast over HW lanes,
    # multiply and store in the input dtype (packed stores).
    o_ref[0] = (x * s.astype(x.dtype)).astype(o_ref.dtype)


def se_block(x_nchw, w1, b1, w2, b2):
    """x_nchw: (N, C, H, W); w1: (Cr, C); b1: (Cr,); w2: (C, Cr); b2: (C,)."""
    N, C, H, W = x_nchw.shape
    Cr = w1.shape[0]
    HW = H * W

    # Pure reshape of the PyTorch NCHW layout -- no data movement.
    x = x_nchw.reshape(N, C, HW)
    w1t = w1.T                 # (C, Cr)  so FC1 contracts over sublanes
    b1r = b1.reshape(1, Cr)
    b2c = b2.reshape(C, 1)

    # Raise the scoped VMEM limit only if the double-buffered blocks need it.
    itemsize = jnp.dtype(x_nchw.dtype).itemsize
    vmem_needed = 4 * C * HW * itemsize + 8 * (2 * C * Cr + Cr + C) * 4
    vmem_limit = None
    if vmem_needed > (32 << 20):
        vmem_limit = int(min(vmem_needed + (4 << 20), 96 << 20))

    out = pl.pallas_call(
        se_kernel,
        out_shape=jax.ShapeDtypeStruct((N, C, HW), x_nchw.dtype),
        grid_spec=pltpu.PrefetchScalarGridSpec(
            num_scalar_prefetch=0,
            grid=(N,),
            in_specs=[
                pl.BlockSpec((1, C, HW), lambda n: (n, 0, 0)),   # one batch element
                pl.BlockSpec((C, Cr), lambda n: (0, 0)),         # FC1 weight (transposed)
                pl.BlockSpec((1, Cr), lambda n: (0, 0)),         # FC1 bias (row)
                pl.BlockSpec((C, Cr), lambda n: (0, 0)),         # FC2 weight (native)
                pl.BlockSpec((C, 1), lambda n: (0, 0)),          # FC2 bias (column)
            ],
            out_specs=pl.BlockSpec((1, C, HW), lambda n: (n, 0, 0)),
        ),
        compiler_params=pltpu.CompilerParams(
            dimension_semantics=("parallel",),
            vmem_limit_bytes=vmem_limit,
        ),
    )(x, w1t, b1r, w2, b2c)

    return out.reshape(N, C, H, W)


if __name__ == "__main__":
    key = jax.random.PRNGKey(0)
    kx, k1, k2, k3, k4 = jax.random.split(key, 5)

    # Shapes implied by SeBlock(in_channel=8, reduction=4)
    N, C, H, W = 2, 8, 16, 16
    reduction = 4
    Cr = C // reduction

    x = jax.random.normal(kx, (N, C, H, W), jnp.float32)
    # Deterministic synthetic parameters (nn.Conv2d(k=1) weights squeezed).
    w1 = jax.random.normal(k1, (Cr, C), jnp.float32) * 0.1
    b1 = jax.random.normal(k2, (Cr,), jnp.float32) * 0.1
    w2 = jax.random.normal(k3, (C, Cr), jnp.float32) * 0.1
    b2 = jax.random.normal(k4, (C,), jnp.float32) * 0.1

    out = jax.block_until_ready(se_block(x, w1, b1, w2, b2))

    # Pure-JAX reference for correctness check.
    pooled = jnp.mean(x, axis=(2, 3))                    # (N, C)
    h = jnp.maximum(pooled @ w1.T + b1, 0.0)             # (N, Cr)
    s = jax.nn.sigmoid(h @ w2.T + b2)                    # (N, C)
    ref = x * s[:, :, None, None]

    assert out.shape == x.shape and out.dtype == x.dtype
    assert jnp.allclose(out, ref, atol=1e-5, rtol=1e-5)
    print("KERNEL_OK")
</pallas_src>

<mosaic_0001>
module attributes {stable_mosaic.version = 11 : i64} {
  func.func @se_kernel(%arg0: i32, %arg1: memref<1x8x256xf32, #tpu.memory_space<vmem>>, %arg2: memref<8x2xf32, #tpu.memory_space<vmem>>, %arg3: memref<1x2xf32, #tpu.memory_space<vmem>>, %arg4: memref<8x2xf32, #tpu.memory_space<vmem>>, %arg5: memref<8x1xf32, #tpu.memory_space<vmem>>, %arg6: memref<1x8x256xf32, #tpu.memory_space<vmem>>) attributes {dimension_semantics = [#tpu.dimension_semantics<parallel>], iteration_bounds = array<i64: 2>, scalar_prefetch = 0 : i64, scratch_operands = 0 : i64, tpu.core_type = #tpu.core_type<tc>, window_params = [{transform_indices = @transform_0, window_bounds = array<i64: 1, 8, 256>}, {pipeline_mode = #tpu.pipeline_mode<synchronous>, transform_indices = @transform_1, window_bounds = array<i64: 8, 2>}, {pipeline_mode = #tpu.pipeline_mode<synchronous>, transform_indices = @transform_2, window_bounds = array<i64: 1, 2>}, {pipeline_mode = #tpu.pipeline_mode<synchronous>, transform_indices = @transform_3, window_bounds = array<i64: 8, 2>}, {pipeline_mode = #tpu.pipeline_mode<synchronous>, transform_indices = @transform_4, window_bounds = array<i64: 8, 1>}, {transform_indices = @transform_5, window_bounds = array<i64: 1, 8, 256>}]} {
    %c0 = arith.constant 0 : index
    %c0_0 = arith.constant 0 : index
    %c0_1 = arith.constant 0 : index
    %0 = vector.load %arg1[%c0, %c0_0, %c0_1] : memref<1x8x256xf32, #tpu.memory_space<vmem>>, vector<1x8x256xf32>
    %1 = vector.shape_cast %0 : vector<1x8x256xf32> to vector<8x256xf32>
    %cst = arith.constant dense<0.000000e+00> : vector<8xf32>
    %2 = vector.multi_reduction <add>, %1, %cst [1] : vector<8x256xf32> to vector<8xf32>
    %3 = vector.shape_cast %2 : vector<8xf32> to vector<8x1xf32>
    %cst_2 = arith.constant 3.906250e-03 : f32
    %4 = vector.broadcast %cst_2 : f32 to vector<8x1xf32>
    %5 = arith.mulf %3, %4 : vector<8x1xf32>
    %c0_3 = arith.constant 0 : index
    %c0_4 = arith.constant 0 : index
    %6 = vector.load %arg2[%c0_3, %c0_4] : memref<8x2xf32, #tpu.memory_space<vmem>>, vector<8x2xf32>
    %7 = vector.broadcast %5 : vector<8x1xf32> to vector<8x2xf32>
    %8 = arith.mulf %6, %7 : vector<8x2xf32>
    %cst_5 = arith.constant dense<0.000000e+00> : vector<2xf32>
    %9 = vector.multi_reduction <add>, %8, %cst_5 [0] : vector<8x2xf32> to vector<2xf32>
    %10 = vector.shape_cast %9 : vector<2xf32> to vector<1x2xf32>
    %c0_6 = arith.constant 0 : index
    %c0_7 = arith.constant 0 : index
    %11 = vector.load %arg3[%c0_6, %c0_7] : memref<1x2xf32, #tpu.memory_space<vmem>>, vector<1x2xf32>
    %12 = arith.addf %10, %11 : vector<1x2xf32>
    %cst_8 = arith.constant 0.000000e+00 : f32
    %13 = vector.broadcast %cst_8 : f32 to vector<1x2xf32>
    %14 = arith.maximumf %12, %13 : vector<1x2xf32>
    %c0_9 = arith.constant 0 : index
    %c0_10 = arith.constant 0 : index
    %15 = vector.load %arg4[%c0_9, %c0_10] : memref<8x2xf32, #tpu.memory_space<vmem>>, vector<8x2xf32>
    %16 = vector.broadcast %14 : vector<1x2xf32> to vector<8x2xf32>
    %17 = arith.mulf %15, %16 : vector<8x2xf32>
    %cst_11 = arith.constant dense<0.000000e+00> : vector<8xf32>
    %18 = vector.multi_reduction <add>, %17, %cst_11 [1] : vector<8x2xf32> to vector<8xf32>
    %19 = vector.shape_cast %18 : vector<8xf32> to vector<8x1xf32>
    %c0_12 = arith.constant 0 : index
    %c0_13 = arith.constant 0 : index
    %20 = vector.load %arg5[%c0_12, %c0_13] : memref<8x1xf32, #tpu.memory_space<vmem>>, vector<8x1xf32>
    %21 = arith.addf %19, %20 : vector<8x1xf32>
    %22 = arith.negf %21 : vector<8x1xf32>
    %23 = math.exp %22 : vector<8x1xf32>
    %cst_14 = arith.constant 1.000000e+00 : f32
    %24 = vector.broadcast %cst_14 : f32 to vector<8x1xf32>
    %25 = arith.addf %24, %23 : vector<8x1xf32>
    %26 = arith.divf %24, %25 : vector<8x1xf32>
    %27 = vector.broadcast %26 : vector<8x1xf32> to vector<8x256xf32>
    %28 = arith.mulf %1, %27 : vector<8x256xf32>
    %c0_15 = arith.constant 0 : index
    %c0_16 = arith.constant 0 : index
    %c0_17 = arith.constant 0 : index
    %29 = vector.load %arg6[%c0_15, %c0_16, %c0_17] : memref<1x8x256xf32, #tpu.memory_space<vmem>>, vector<1x8x256xf32>
    %30 = vector.shape_cast %29 : vector<1x8x256xf32> to vector<8x256xf32>
    %31 = vector.shape_cast %28 : vector<8x256xf32> to vector<1x8x256xf32>
    tpu.vector_store %arg6[%c0_15, %c0_16, %c0_17], %31 {strides = array<i32>} : memref<1x8x256xf32, #tpu.memory_space<vmem>>, vector<1x8x256xf32>,
    return
  }
  func.func @transform_0(%arg0: i32) -> (i32, i32, i32) {
    %c0_i32 = arith.constant 0 : i32
    %c0_i32_0 = arith.constant 0 : i32
    %c0_i32_1 = arith.constant 0 : i32
    return %arg0, %c0_i32, %c0_i32_0 : i32, i32, i32
  }
  func.func @transform_1(%arg0: i32) -> (i32, i32) {
    %c0_i32 = arith.constant 0 : i32
    %c0_i32_0 = arith.constant 0 : i32
    %c0_i32_1 = arith.constant 0 : i32
    return %c0_i32, %c0_i32_0 : i32, i32
  }
  func.func @transform_2(%arg0: i32) -> (i32, i32) {
    %c0_i32 = arith.constant 0 : i32
    %c0_i32_0 = arith.constant 0 : i32
    %c0_i32_1 = arith.constant 0 : i32
    return %c0_i32, %c0_i32_0 : i32, i32
  }
  func.func @transform_3(%arg0: i32) -> (i32, i32) {
    %c0_i32 = arith.constant 0 : i32
    %c0_i32_0 = arith.constant 0 : i32
    %c0_i32_1 = arith.constant 0 : i32
    return %c0_i32, %c0_i32_0 : i32, i32
  }
  func.func @transform_4(%arg0: i32) -> (i32, i32) {
    %c0_i32 = arith.constant 0 : i32
    %c0_i32_0 = arith.constant 0 : i32
    %c0_i32_1 = arith.constant 0 : i32
    return %c0_i32, %c0_i32_0 : i32, i32
  }
  func.func @transform_5(%arg0: i32) -> (i32, i32, i32) {
    %c0_i32 = arith.constant 0 : i32
    %c0_i32_0 = arith.constant 0 : i32
    %c0_i32_1 = arith.constant 0 : i32
    return %arg0, %c0_i32, %c0_i32_0 : i32, i32, i32
  }
}

</mosaic_0001>

<bundles_post_ra>
// kernel: tpu_custom_call.1
= control target key start
LH: loop header
LB: loop body
LE: loop exit
PB: predicated region body
PF: predicated region fallthrough
CT: control target
= control target key end

     0   :  { %10 = vsyncpa [#allocation3], 0  ;;  %s751_s0 = inlined_call_operand.hbm [shape: f32[2,8,256], index: 0, kind: input, shape index: {}]   ;;  %s752_s1 = inlined_call_operand.vmem [shape: f32[8,2], index: 1, kind: input, shape index: {}]   ;;  %s753_s2 = inlined_call_operand.vmem [shape: f32[1,2], index: 2, kind: input, shape index: {}]   ;;  %s754_s3 = inlined_call_operand.vmem [shape: f32[8,2], index: 3, kind: input, shape index: {}]   ;;  %s755_s4 = inlined_call_operand.vmem [shape: f32[8,1], index: 4, kind: input, shape index: {}]   ;;  %s756_s5 = inlined_call_operand.hbm [shape: f32[2,8,256], index: 5, kind: output, shape index: {}]  }
   0x1   :  { %12 = vsyncpa [#allocation3 + $0x1], 0 }
   0x2   :  { %13 = vsyncpa [#allocation4], 0 }
   0x3   :  { %15 = vsyncpa [#allocation4 + $0x1], 0  ;;  %s572_s18 = smov 0   ;;  %s574_s19 = smov 0  }
   0x4   :  { %s576_s20 = smov 0   ;;  %s578_s21 = smov 0  }
   0x5 LB: > { %s593_s22 = sadd.s32 4294967295, %s537_s21   ;;  %s371_s23 = sadd.s32 4294967294, %s537_s21   ;;  %s537_s21 = sphi %s578_s21, %s771_s21   ;;  %s533_s20 = sphi %s576_s20, %s770_s20   ;;  %s529_s19 = sphi %s574_s19, %s769_s19   ;;  %s525_s18 = sphi %s572_s18, %s768_s18  }
   0x6   : > { %s597_s24 = sadd.s32 1, %s537_s21   ;;  %s28_s25 = sadd.s32 1, %s533_s20 }
   0x7   : > { %s25_s26 = ssub.s32 %s537_s21, %s597_s24  ;;  %p35_p0 = scmp.ne.s32.totalorder %s533_s20, %s529_s19 }
   0x8   : > { %p26_p1 = scmp.eq.s32.totalorder %s25_s26, 0  ;;  %p36_p2 = scmp.eq.s32.totalorder %s537_s21, 0 }
   0x9   : > { %p41_p3 = scmp.ne.s32.totalorder %s529_s19, %s525_s18  ;;  %p42_p4 = scmp.eq.s32.totalorder %s593_s22, 0 }
   0xa   : > { %s609_s27 = scalar_select %p26_p1, %s533_s20, %s28_s25  }
   0xb   : > { %p611_p5 = por %p36_p2, %p35_p0  ;;  %p615_p6 = por %p42_p4, %p41_p3 }
   0xc   : > { %p149_p7 = scmp.eq.s32.totalorder %s593_s22, 1  ;;  %p155_p8 = scmp.eq.s32.totalorder %s371_s23, 1 }
   0xd   : > { %p400_p10 = scmp.lt.s32.totalorder %s537_s21, 2  ;;  %s187_s7 = sand.u32 1, %s533_s20  }
   0xe   : > { %p622_p11 = por %p149_p7, %p35_p0  ;;  %p626_p12 = por %p155_p8, %p41_p3 }
   0xf   : > { %s386_s8 = sshll.u32 %s537_s21, 8  ;;  %s374_s9 = sshll.u32 %s187_s7, 4 }
  0x10   : > { %s760_s30 = scalar_select %p622_p11, 1, 0 }
  0x11   : > { %s761_s6 = scalar_select %p626_p12, 1, 0 }
  0x12   : > { %s635_s12 = scalar_lea.hbm %s751_s0, %s386_s8  ;;  %s191_s13 = scalar_lea.vmem [#allocation2], %s374_s9 }
  0x13   : > { %s199_s14 = sshll.u32 %s191_s13, 4  ;;  %p639_p13 = pnand %p400_p10, %p611_p5  ;;  %s643_s14 = int_to_ptr.vmem [resolvable:$true] %s199_s14 }
  0x14   : > { %s188_s16 = scalar_lea.sflag [#allocation3], %s187_s7  ;;  %s441_s17 = scalar_lea.hbm %s635_s12, 256 }
  0x15   : > { %p442_p2 = scmp.ne.s32.totalorder %s635_s12, %s441_s17  ;;  %p443_p3 = pneg %p639_p13 }
  0x16   : > { %s446_s26 = scalar_lea.hbm %s751_s0, 512  ;;  %p447_p5 = scmp.lt.u32.totalorder %s635_s12, %s751_s0 }
  0x17   : > { %p444_p4 = pnand %p443_p3, %p442_p2  ;;  %p448_p8 = scmp.lt.u32.totalorder %s446_s26, %s441_s17 }
  0x18   : > { %p450_p9 = scmp.lt.u32.totalorder %s441_s17, %s635_s12 }
  0x19   : > { %p445_p7 = pneg %p444_p4  ;;  %p449_p10 = por %p448_p8, %p447_p5 }
  0x1b   : > { %p451_p0 = por %p450_p9, %p449_p10 }
  0x1d   : > { %p452_p1 = pnand %p451_p0, %p445_p7 }
  0x1f   : > { %455 = shalt.err (!%p452_p1)
}
  0x20   : > { %s456_s7 = scalar_lea.vmem %s643_s14, 256  ;;  %s539_s9 = smov [#allocation2]  }
  0x21   : > { %p457_p2 = scmp.ne.s32.totalorder %s643_s14, %s456_s7  ;;  %s461_s10 = sshll.u32 %s539_s9, 4  ;;  %s462_s10 = int_to_ptr.vmem [resolvable:$false] %s461_s10 }
  0x22   : > { %s463_s11 = scalar_lea.vmem %s462_s10, 512  ;;  %p464_p11 = scmp.lt.s32.totalorder %s643_s14, %s462_s10 }
  0x23   : > { %p459_p4 = pnand %p457_p2, %p443_p3  ;;  %p465_p5 = scmp.lt.s32.totalorder %s463_s11, %s456_s7 }
  0x25   : > { %p460_p12 = pneg %p459_p4  ;;  %p466_p8 = por %p465_p5, %p464_p11 }
  0x27   : > { %p467_p9 = pnand %p466_p8, %p460_p12 }
  0x29   : > { %470 = shalt.err (!%p467_p9)
}
  0x2a   : > { %395 = dma.hbm_to_vmem [thread:$0]  (!%p639_p13), %s635_s12, 256, %s643_s14, %s188_s16  }
  0x2b   : > { %p763_p0 = scmp.lt.s32.totalorder %s537_s21, 3  ;;  %p764_p1 = scmp.ge.s32.totalorder %s537_s21, 1 }
  0x2d   : > { %p205_p3 = pnand %p764_p1, %p763_p0 }
  0x2e   : > { %s677_s13 = sand.u32 (!%p205_p3), 1, %s529_s19  }
  0x2f   : > { %208 = sbr.rel (%p205_p3) target bundleno = 540 (0x21c), region = 40  ;;  %s378_s17 = sshll.u32 (!%p205_p3), %s677_s13, 4 }
  0x30   : > { %s211_s23 = scalar_lea.sflag (!%p205_p3), [#allocation3], %s677_s13  ;;  %s214_s15 = scalar_lea.vmem (!%p205_p3), [#allocation2], %s378_s17 }
  0x36   : > { %516 = dma.done.wait (%p615_p6), %s211_s23, 256  }
  0x37   : > { %518 = vsyncadd (%p615_p6), %s211_s23, 4294967040  ;;  %v241_v0 = vld [vmem:[%s214_s15] sm:$0xff]  ;;  %v242_v1 = vld [vmem:[%s214_s15 + $0x8] sm:$0xff]  ;;  %vm249_vm0 = vcmask 15360   ;;  %v261_v11 = vlaneseq  ;;  %v540_v24 = vmov 0   ;;  %s387_s7 = sshll.u32 %s593_s22, 8 }
  0x38   : > { %v243_v2 = vadd.f32 %v242_v1, %v241_v0  ;;  %v247_v3 = vld [vmem:[%s752_s1] sm:$0xff]  ;;  %435 = vset.pattern.permute.xlu1 %v540_v24  ;;  %436 = vset.pattern.permute.xlu0 %v540_v24  ;;  %s240_s9 = scalar_lea.vmem [#allocation5], %s378_s17  ;;  %s707_s15 = scalar_lea.hbm %s756_s5, %s387_s7 }
  0x39   : > { %v262_v14 = vshrl.u32 %v261_v11, 7  ;;  %v257_v15 = vld [vmem:[%s753_s2] sm:$0x1]  ;;  %s301_s10 = sshll.u32 %s240_s9, 4  ;;  %s287_s12 = scalar_lea.sflag [#allocation4], %s677_s13  ;;  %s709_s10 = int_to_ptr.vmem [resolvable:$true] %s301_s10 }
  0x3a   : > { %244 = vadd.xlane.f32.xlu0 %v243_v2  ;;  %v260_v20 = vld [vmem:[%s754_s3] sm:$0xff]  ;;  %s471_s22 = scalar_lea.vmem %s709_s10, 256  ;;  %p765_p11 = scmp.ne.s32.totalorder %s760_s30, 0 }
  0x3b   : > { %v263_v18 = vsub.s32 0, %v262_v14  ;;  %v269_v25 = vld [vmem:[%s755_s4] sm:$0xff]  ;;  %p472_p6 = scmp.ne.s32.totalorder %s709_s10, %s471_s22  ;;  %s541_s17 = smov [#allocation5]  }
  0x3c   : > { %s475_s14 = sshll.u32 %s541_s17, 4  ;;  %s476_s14 = int_to_ptr.vmem [resolvable:$false] %s475_s14 }
  0x3d   : > { %p473_p12 = pnand %p472_p6, %p765_p11  ;;  %s477_s29 = scalar_lea.vmem %s476_s14, 512 }
  0x3e   : > { %p478_p7 = scmp.lt.s32.totalorder %s709_s10, %s476_s14  ;;  %p479_p10 = scmp.lt.s32.totalorder %s477_s29, %s471_s22 }
  0x3f   : > { %p474_p13 = pneg %p473_p12 }
  0x40   : > { %p480_p2 = por %p479_p10, %p478_p7 }
  0x42   : > { %p481_p4 = pnand %p480_p2, %p474_p13 }
  0xc7   : > { %v245_v4 = vpop.xlane.xlu0 %244 }
  0xc8   : > { %v246_v5 = vmul.f32 0.00390625, %v245_v4 }
  0xca   : > { %v248_v6 = vmul.f32 %v247_v3, %v246_v5 }
  0xcc   : > { %v250_v7 = vsel %vm249_vm0, %v248_v6, 0.0 }
  0xcd   : > { %v251_v8 = vrot.slane %v250_v7, 4 }
  0xcf   : > { %v252_v9 = vadd.f32 %v251_v8, %v250_v7 }
  0xd1   : > { %v253_v10 = vrot.slane %v252_v9, 2 }
  0xd3   : > { %v254_v12 = vadd.f32 %v253_v10, %v252_v9 }
  0xd5   : > { %v255_v13 = vrot.slane %v254_v12, 1 }
  0xd7   : > { %v256_v16 = vadd.f32 %v255_v13, %v254_v12 }
  0xd9   : > { %v258_v17 = vadd.f32 %v257_v15, %v256_v16 }
  0xdb   : > { %v259_v19 = vmax.f32 %v258_v17, 0.0 }
  0xdd   : > { %v264_v21 = vrot.slane %v259_v19, %v263_v18 }
  0xdf   : > { %v265_v22 = vmul.f32 %v264_v21, %v260_v20 }
  0xe1   : > { %v266_v23 = vsel %vm249_vm0, %v265_v22, 0.0 }
  0xe2   : > { %267 = vadd.xlane.f32.xlu0 %v266_v23 }
 0x16f   : > { %v268_v26 = vpop.xlane.xlu0 %267 }
 0x170   : > { %v270_v27 = vadd.f32 %v269_v25, %v268_v26 }
 0x172   : > { %v380_v28 = vmul.f32 -1.442695, %v270_v27 }
 0x174   : > { %437 = vpow2.f32 %v380_v28 }
 0x17e   : > { %v438_v29 = vpop.eup %437 }
 0x17f   : > { %v274_v30 = vadd.f32 1.0, %v438_v29 }
 0x181   : > { %439 = vrcp.f32 %v274_v30 }
 0x18b   : > { %v440_v31 = vpop.eup %439 }
 0x18c   : > { %279 = vperm.xlu1 %435, %v440_v31  }
 0x20b   : > { %v280_v32 = vpop.permute.xlu1 %279 }
 0x20c   : > { %v282_v33 = vmul.f32 %v280_v32, %v241_v0  ;;  %v283_v34 = vmul.f32 %v280_v32, %v242_v1 }
 0x20e   : > { %284 = vst [vmem:[%s240_s9] sm:$0xff] %v282_v33  ;;  %285 = vst [vmem:[%s240_s9 + $0x8] sm:$0xff] %v283_v34 }
 0x20f   : > { %484 = shalt.err (!%p481_p4)
}
 0x210   : > { %s485_s13 = scalar_lea.hbm %s707_s15, 256  ;;  %s489_s26 = scalar_lea.hbm %s756_s5, 512 }
 0x211   : > { %p486_p5 = scmp.ne.s32.totalorder %s707_s15, %s485_s13  ;;  %p490_p0 = scmp.lt.u32.totalorder %s707_s15, %s756_s5 }
 0x212   : > { %p491_p1 = scmp.lt.u32.totalorder %s489_s26, %s485_s13  ;;  %p493_p6 = scmp.lt.u32.totalorder %s485_s13, %s707_s15 }
 0x213   : > { %p487_p8 = pnand %p486_p5, %p765_p11 }
 0x214   : > { %p492_p3 = por %p491_p1, %p490_p0 }
 0x215   : > { %p488_p9 = pneg %p487_p8 }
 0x216   : > { %p494_p12 = por %p493_p6, %p492_p3 }
 0x218   : > { %p495_p13 = pnand %p494_p12, %p488_p9 }
 0x21a   : > { %498 = shalt.err (!%p495_p13)
}
 0x21b   : > { %390 = dma.vmem_to_hbm [thread:$0]  (%p765_p11), %s709_s10, 256, %s707_s15, %s287_s12  }
 0x21c PF: > { %s313_s7 = sand.u32 1, %s525_s18   ;;  %p766_p7 = scmp.ne.s32.totalorder %s761_s6, 0 }
 0x21d   : > { %p767_p10 = scmp.ge.s32.totalorder %s537_s21, 2  ;;  %s314_s9 = scalar_lea.sflag [#allocation4], %s313_s7 }
 0x21f   : > { %p397_p2 = pnand %p767_p10, %p766_p7 }
 0x221   : > { %520 = dma.done.wait (!%p397_p2), %s314_s9, 256  }
 0x222   : > { %522 = vsyncadd (!%p397_p2), %s314_s9, 4294967040  ;;  %p18_p4 = scmp.ge.s32.totalorder %s597_s24, 4   ;;  %s768_s18 = smov %s529_s19 }
 0x223   : > { %s769_s19 = smov %s533_s20  ;;  %s770_s20 = smov %s609_s27 }
 0x224   : > { %s771_s21 = smov %s597_s24  ;;  %20 = sbr.rel (!%p18_p4) target bundleno = 5 (0x5), region = 85 }
 0x22b   :  { %319 = vsyncpa [#allocation3], 1 }
 0x22c   :  { %321 = vsyncpa [#allocation3 + $0x1], 1 }
 0x22d   :  { %322 = vsyncpa [#allocation4], 1 }
 0x22e   :  { %324 = vsyncpa [#allocation4 + $0x1], 1 }

</bundles_post_ra>
